<compile_context>
chip_gen: v5e
topology: v5e:2x2
jax: 0.10.0
libtpu: 0.0.40
codegen_flags: <defaults>
</compile_context>

<pallas_src>
import jax
import jax.numpy as jnp
from jax import lax
from jax.experimental import pallas as pl
from jax.experimental.pallas import tpu as pltpu


def mlp_kernel(x_ref, w1_ref, b1_ref, w2_ref, b2_ref, o_ref):
    # hidden = relu(x @ W1.T + b1)   -- bf16 MXU inputs, f32 accumulate
    x_bf = x_ref[...].astype(jnp.bfloat16)
    w1_bf = w1_ref[...].astype(jnp.bfloat16)
    h = lax.dot_general(
        x_bf, w1_bf,
        dimension_numbers=(((1,), (1,)), ((), ())),   # contract F with F (no transpose)
        preferred_element_type=jnp.float32,
    )
    h = jnp.maximum(h + b1_ref[...], 0.0)             # f32 bias + ReLU on VPU

    # predict = h @ W2.T + b2   (W2 is zero-padded to a lane-dense 128-wide output)
    w2_bf = w2_ref[...].astype(jnp.bfloat16)
    out = lax.dot_general(
        h.astype(jnp.bfloat16), w2_bf,
        dimension_numbers=(((1,), (1,)), ((), ())),
        preferred_element_type=jnp.float32,
    )
    o_ref[...] = (out + b2_ref[...]).astype(o_ref.dtype)


def net_forward(x, w1, b1, w2, b2, *, block_b=512):
    """Pallas implementation of Net.forward.

    x:  (B, n_feature)
    w1: (n_hidden, n_feature)   -- PyTorch Linear weight layout (NOT transposed)
    b1: (n_hidden,)
    w2: (n_output, n_hidden)
    b2: (n_output,)
    """
    B, F = x.shape
    H = w1.shape[0]
    O = w2.shape[0]

    # Lane-dense output: pad n_output up to a multiple of 128 so the final
    # store is an unmasked, full-lane vst; the wrapper slices the real columns.
    O_pad = max(128, ((O + 127) // 128) * 128)
    w2_p = jnp.pad(w2, ((0, O_pad - O), (0, 0)))
    b2_p = jnp.pad(b2, ((0, O_pad - O),)).reshape(1, O_pad)
    b1_r = b1.reshape(1, H)

    # Batch tile: multiple of 8 sublanes, capped at block_b rows; pad B to a
    # whole number of tiles so the grid is exact.
    TB = min(block_b, B)
    TB = max(8, ((TB + 7) // 8) * 8)
    B_pad = ((B + TB - 1) // TB) * TB
    if B_pad != B:
        x = jnp.pad(x, ((0, B_pad - B), (0, 0)))
    grid = (B_pad // TB,)

    cost = pl.CostEstimate(
        flops=2 * B_pad * (F * H + H * O_pad),
        transcendentals=0,
        bytes_accessed=4 * (B_pad * F + H * F + O_pad * H + B_pad * O_pad),
    )

    out_padded = pl.pallas_call(
        mlp_kernel,
        out_shape=jax.ShapeDtypeStruct((B_pad, O_pad), x.dtype),
        grid_spec=pltpu.PrefetchScalarGridSpec(
            num_scalar_prefetch=0,
            grid=grid,
            in_specs=[
                pl.BlockSpec((TB, F), lambda i: (i, 0)),      # x: tiled over batch
                pl.BlockSpec((H, F), lambda i: (0, 0)),       # W1: resident constant block
                pl.BlockSpec((1, H), lambda i: (0, 0)),       # b1
                pl.BlockSpec((O_pad, H), lambda i: (0, 0)),   # W2 (lane-padded)
                pl.BlockSpec((1, O_pad), lambda i: (0, 0)),   # b2 (lane-padded)
            ],
            out_specs=pl.BlockSpec((TB, O_pad), lambda i: (i, 0)),
        ),
        compiler_params=pltpu.CompilerParams(
            dimension_semantics=("parallel",),                # shard batch across TCs on v7x
        ),
        cost_estimate=cost,
    )(x, w1, b1_r, w2_p, b2_p)

    return out_padded[:B, :O]


def init_linear_params(key, n_in, n_out):
    # Deterministic init mimicking torch.nn.Linear default: U(-1/sqrt(n_in), 1/sqrt(n_in))
    kw, kb = jax.random.split(key)
    bound = 1.0 / (n_in ** 0.5)
    w = jax.random.uniform(kw, (n_out, n_in), jnp.float32, -bound, bound)
    b = jax.random.uniform(kb, (n_out,), jnp.float32, -bound, bound)
    return w, b


if __name__ == "__main__":
    key = jax.random.PRNGKey(0)
    k_x, k_h, k_p = jax.random.split(key, 3)

    B, n_feature, n_hidden, n_output = 8, 4, 32, 2

    x = jax.random.normal(k_x, (B, n_feature), jnp.float32)
    w1, b1 = init_linear_params(k_h, n_feature, n_hidden)
    w2, b2 = init_linear_params(k_p, n_hidden, n_output)

    out = net_forward(x, w1, b1, w2, b2)
    out = jax.block_until_ready(out)

    # Reference check in plain JAX f32 (same math as the PyTorch forward);
    # tolerance accounts for the bf16 MXU inputs (f32 accumulation).
    ref = jnp.maximum(x @ w1.T + b1, 0.0) @ w2.T + b2
    assert out.shape == (B, n_output)
    assert jnp.allclose(out, ref, atol=5e-2, rtol=5e-2)

    print("KERNEL_OK")
</pallas_src>

<mosaic_0001>
module attributes {stable_mosaic.version = 11 : i64} {
  func.func @mlp_kernel(%arg0: i32, %arg1: memref<8x4xf32, #tpu.memory_space<vmem>>, %arg2: memref<32x4xf32, #tpu.memory_space<vmem>>, %arg3: memref<1x32xf32, #tpu.memory_space<vmem>>, %arg4: memref<128x32xf32, #tpu.memory_space<vmem>>, %arg5: memref<1x128xf32, #tpu.memory_space<vmem>>, %arg6: memref<8x128xf32, #tpu.memory_space<vmem>>) attributes {dimension_semantics = [#tpu.dimension_semantics<parallel>], iteration_bounds = array<i64: 1>, scalar_prefetch = 0 : i64, scratch_operands = 0 : i64, tpu.core_type = #tpu.core_type<tc>, window_params = [{transform_indices = @transform_0, window_bounds = array<i64: 8, 4>}, {pipeline_mode = #tpu.pipeline_mode<synchronous>, transform_indices = @transform_1, window_bounds = array<i64: 32, 4>}, {pipeline_mode = #tpu.pipeline_mode<synchronous>, transform_indices = @transform_2, window_bounds = array<i64: 1, 32>}, {pipeline_mode = #tpu.pipeline_mode<synchronous>, transform_indices = @transform_3, window_bounds = array<i64: 128, 32>}, {pipeline_mode = #tpu.pipeline_mode<synchronous>, transform_indices = @transform_4, window_bounds = array<i64: 1, 128>}, {transform_indices = @transform_5, window_bounds = array<i64: 8, 128>}]} {
    %c0 = arith.constant 0 : index
    %c0_0 = arith.constant 0 : index
    %0 = vector.load %arg1[%c0, %c0_0] : memref<8x4xf32, #tpu.memory_space<vmem>>, vector<8x4xf32>
    %1 = arith.truncf %0 : vector<8x4xf32> to vector<8x4xbf16>
    %c0_1 = arith.constant 0 : index
    %c0_2 = arith.constant 0 : index
    %2 = vector.load %arg2[%c0_1, %c0_2] : memref<32x4xf32, #tpu.memory_space<vmem>>, vector<32x4xf32>
    %3 = arith.truncf %2 : vector<32x4xf32> to vector<32x4xbf16>
    %cst = arith.constant dense<0.000000e+00> : vector<8x32xf32>
    %4 = tpu.matmul %1, %3, %cst {dimension_numbers = #tpu.dot_dimension_numbers<[1], [1], [0], [0], [0, 0, 1, 0], [], []>} : vector<8x4xbf16>, vector<32x4xbf16>, vector<8x32xf32> -> vector<8x32xf32>
    %c0_3 = arith.constant 0 : index
    %c0_4 = arith.constant 0 : index
    %5 = vector.load %arg3[%c0_3, %c0_4] : memref<1x32xf32, #tpu.memory_space<vmem>>, vector<1x32xf32>
    %6 = vector.broadcast %5 : vector<1x32xf32> to vector<8x32xf32>
    %7 = arith.addf %4, %6 : vector<8x32xf32>
    %cst_5 = arith.constant 0.000000e+00 : f32
    %8 = vector.broadcast %cst_5 : f32 to vector<8x32xf32>
    %9 = arith.maximumf %7, %8 : vector<8x32xf32>
    %c0_6 = arith.constant 0 : index
    %c0_7 = arith.constant 0 : index
    %10 = vector.load %arg4[%c0_6, %c0_7] : memref<128x32xf32, #tpu.memory_space<vmem>>, vector<128x32xf32>
    %11 = arith.truncf %10 : vector<128x32xf32> to vector<128x32xbf16>
    %12 = arith.truncf %9 : vector<8x32xf32> to vector<8x32xbf16>
    %cst_8 = arith.constant dense<0.000000e+00> : vector<8x128xf32>
    %13 = tpu.matmul %12, %11, %cst_8 {dimension_numbers = #tpu.dot_dimension_numbers<[1], [1], [0], [0], [0, 0, 1, 0], [], []>} : vector<8x32xbf16>, vector<128x32xbf16>, vector<8x128xf32> -> vector<8x128xf32>
    %c0_9 = arith.constant 0 : index
    %c0_10 = arith.constant 0 : index
    %14 = vector.load %arg5[%c0_9, %c0_10] : memref<1x128xf32, #tpu.memory_space<vmem>>, vector<1x128xf32>
    %15 = vector.broadcast %14 : vector<1x128xf32> to vector<8x128xf32>
    %16 = arith.addf %13, %15 : vector<8x128xf32>
    %c0_11 = arith.constant 0 : index
    %c0_12 = arith.constant 0 : index
    %17 = vector.load %arg6[%c0_11, %c0_12] : memref<8x128xf32, #tpu.memory_space<vmem>>, vector<8x128xf32>
    tpu.vector_store %arg6[%c0_11, %c0_12], %16 {strides = array<i32>} : memref<8x128xf32, #tpu.memory_space<vmem>>, vector<8x128xf32>,
    return
  }
  func.func @transform_0(%arg0: i32) -> (i32, i32) {
    %c0_i32 = arith.constant 0 : i32
    %c0_i32_0 = arith.constant 0 : i32
    return %arg0, %c0_i32 : i32, i32
  }
  func.func @transform_1(%arg0: i32) -> (i32, i32) {
    %c0_i32 = arith.constant 0 : i32
    %c0_i32_0 = arith.constant 0 : i32
    %c0_i32_1 = arith.constant 0 : i32
    return %c0_i32, %c0_i32_0 : i32, i32
  }
  func.func @transform_2(%arg0: i32) -> (i32, i32) {
    %c0_i32 = arith.constant 0 : i32
    %c0_i32_0 = arith.constant 0 : i32
    %c0_i32_1 = arith.constant 0 : i32
    return %c0_i32, %c0_i32_0 : i32, i32
  }
  func.func @transform_3(%arg0: i32) -> (i32, i32) {
    %c0_i32 = arith.constant 0 : i32
    %c0_i32_0 = arith.constant 0 : i32
    %c0_i32_1 = arith.constant 0 : i32
    return %c0_i32, %c0_i32_0 : i32, i32
  }
  func.func @transform_4(%arg0: i32) -> (i32, i32) {
    %c0_i32 = arith.constant 0 : i32
    %c0_i32_0 = arith.constant 0 : i32
    %c0_i32_1 = arith.constant 0 : i32
    return %c0_i32, %c0_i32_0 : i32, i32
  }
  func.func @transform_5(%arg0: i32) -> (i32, i32) {
    %c0_i32 = arith.constant 0 : i32
    %c0_i32_0 = arith.constant 0 : i32
    return %arg0, %c0_i32 : i32, i32
  }
}

</mosaic_0001>

<bundles_post_ra>
// kernel: tpu_custom_call.1
= control target key start
LH: loop header
LB: loop body
LE: loop exit
PB: predicated region body
PF: predicated region fallthrough
CT: control target
= control target key end

     0   :  { %vm34_vm0 = vcmask 31744   ;;  %vm87_vm1 = vcmask 261120   ;;  %s291_s0 = inlined_call_operand.vmem [shape: f32[8,4], index: 0, kind: input, shape index: {}]   ;;  %s292_s1 = inlined_call_operand.vmem [shape: f32[32,4], index: 1, kind: input, shape index: {}]   ;;  %s293_s2 = inlined_call_operand.vmem [shape: f32[1,32], index: 2, kind: input, shape index: {}]   ;;  %s294_s3 = inlined_call_operand.vmem [shape: f32[128,32], index: 3, kind: input, shape index: {}]   ;;  %s295_s4 = inlined_call_operand.vmem [shape: f32[1,128], index: 4, kind: input, shape index: {}]   ;;  %s296_s5 = inlined_call_operand.hbm [shape: f32[8,128], index: 5, kind: output, shape index: {}]  }
   0x1   :  { %v26_v0 = vld [vmem:[%s292_s1 + $0x10] sm:$0xff]  ;;  %v27_v1 = vld [vmem:[%s292_s1 + $0x18] sm:$0xff]  ;;  %v24_v4 = vld [vmem:[%s292_s1] sm:$0xff] }
   0x2   :  { %v29_v2 = vpack.c.bf16 %v27_v1, %v26_v0  ;;  %v72_v3 = vld [vmem:[%s294_s3 + $0x70] sm:$0xff]  ;;  %v25_v5 = vld [vmem:[%s292_s1 + $0x8] sm:$0xff]  ;;  %v73_v6 = vld [vmem:[%s294_s3 + $0x78] sm:$0xff] }
   0x3   :  { %v81_v8 = vpack.c.bf16 %v73_v6, %v72_v3  ;;  %v70_v9 = vld [vmem:[%s294_s3 + $0x60] sm:$0xff]  ;;  %v71_v10 = vld [vmem:[%s294_s3 + $0x68] sm:$0xff]  ;;  %v28_v11 = vpack.c.bf16 %v25_v5, %v24_v4 }
   0x4   :  { %v42_v7 = vsel %vm34_vm0, %v29_v2, 0 }
   0x5   :  { %50 = vmatpush.bf16.xpose.msra.mxu0 %v42_v7  ;;  %v113_v12 = vsel %vm87_vm1, %v81_v8, 0 }
   0x6   :  { %115 = vmatpush.bf16.xpose.msra.mxu1 %v113_v12 }
   0x7   :  { %10 = vsyncpa [#allocation3], 0  ;;  %v80_v13 = vpack.c.bf16 %v71_v10, %v70_v9  ;;  %v39_v14 = vsel %vm34_vm0, %v28_v11, 0  ;;  %v22_v16 = vld [vmem:[%s291_s0] sm:$0xff]  ;;  %v68_v17 = vld [vmem:[%s294_s3 + $0x50] sm:$0xff]  ;;  %s136_s14 = sshll.u32 %s296_s5, 4  ;;  %s137_s14 = int_to_ptr.hbm [resolvable:$true] %s136_s14 }
   0x8   :  { %v69_v18 = vld [vmem:[%s294_s3 + $0x58] sm:$0xff]  ;;  %v23_v19 = vpack.c.bf16 %v22_v16, %v22_v16  ;;  %v66_v22 = vld [vmem:[%s294_s3 + $0x40] sm:$0xff]  ;;  %v67_v23 = vld [vmem:[%s294_s3 + $0x48] sm:$0xff] }
   0x9   :  { %v110_v15 = vsel %vm87_vm1, %v80_v13, 0  ;;  %v79_v20 = vpack.c.bf16 %v69_v18, %v68_v17  ;;  %v78_v24 = vpack.c.bf16 %v67_v23, %v66_v22  ;;  %v64_v26 = vld [vmem:[%s294_s3 + $0x30] sm:$0xff]  ;;  %v65_v27 = vld [vmem:[%s294_s3 + $0x38] sm:$0xff]  ;;  %v62_v30 = vld [vmem:[%s294_s3 + $0x20] sm:$0xff] }
   0xa   :  { %v77_v28 = vpack.c.bf16 %v65_v27, %v64_v26  ;;  %v63_v31 = vld [vmem:[%s294_s3 + $0x28] sm:$0xff]  ;;  %v60_v34 = vld [vmem:[%s294_s3 + $0x10] sm:$0xff]  ;;  %v61_v35 = vld [vmem:[%s294_s3 + $0x18] sm:$0xff] }
   0xb   :  { %v107_v21 = vsel %vm87_vm1, %v79_v20, 0  ;;  %v104_v25 = vsel %vm87_vm1, %v78_v24, 0  ;;  %v76_v32 = vpack.c.bf16 %v63_v31, %v62_v30  ;;  %v75_v36 = vpack.c.bf16 %v61_v35, %v60_v34  ;;  %v58_v38 = vld [vmem:[%s294_s3] sm:$0xff]  ;;  %v59_v39 = vld [vmem:[%s294_s3 + $0x8] sm:$0xff]  ;;  %s176_s3 = smov [#allocation2]  }
   0xc   :  { %v101_v29 = vsel %vm87_vm1, %v77_v28, 0  ;;  %v74_v40 = vpack.c.bf16 %v59_v39, %v58_v38  ;;  %v148_v42 = vld [vmem:[%s293_s2] ss:$0 sm:$0xff]  ;;  %s134_s11 = sshll.u32 %s176_s3, 4  ;;  %s135_s11 = int_to_ptr.vmem [resolvable:$true] %s134_s11 }
   0xd   :  { %51 = vmatpush.bf16.xpose.msra.mxu0 %v39_v14  ;;  %v98_v33 = vsel %vm87_vm1, %v76_v32, 0  ;;  %v95_v37 = vsel %vm87_vm1, %v75_v36, 0  ;;  %v149_v48 = vld [vmem:[%s295_s4] ss:$0 sm:$0xff] }
   0xe   :  { %116 = vmatpush.bf16.xpose.msra.mxu1 %v110_v15  ;;  %v92_v41 = vsel %vm87_vm1, %v74_v40, 0 }
  0x14   :  { %145 = vmatmul.msk.bf16.vlgmr.msra.gmra.mxu0 %vm34_vm0, %v23_v19 }
  0x16   :  { %117 = vmatpush.bf16.xpose.msra.mxu1 %v107_v21 }
  0x1e   :  { %118 = vmatpush.bf16.xpose.msra.mxu1 %v104_v25 }
  0x26   :  { %119 = vmatpush.bf16.xpose.msra.mxu1 %v101_v29 }
  0x2e   :  { %120 = vmatpush.bf16.xpose.msra.mxu1 %v98_v33 }
  0x36   :  { %121 = vmatpush.bf16.xpose.msra.mxu1 %v95_v37 }
  0x3e   :  { %122 = vmatpush.bf16.xpose.msra.mxu1 %v92_v41 }
  0x91   :  { %v53_v43 = vpop.f32.mrf.mxu0 }
  0x92   :  { %v54_v44 = vadd.f32 %v148_v42, %v53_v43 }
  0x94   :  { %v57_v45 = vmax.f32 %v54_v44, 0.0 }
  0x96   :  { %v82_v46 = vpack.c.bf16 %v57_v45, %v57_v45 }
  0x98   :  { %146 = vmatmul.msk.bf16.vlgmr.msra.gmra.mxu1 %vm87_vm1, %v82_v46 }
  0x99   :  { %v55_v47 = vpop.f32.mrf.mxu0 }
 0x115   :  { %v124_v49 = vpop.f32.mrf.mxu1 }
 0x116   :  { %v125_v50 = vadd.f32 %v149_v48, %v124_v49 }
 0x118   :  { %128 = vst [vmem:[#allocation2] sm:$0xff] %v125_v50 }
 0x119   :  { %139 = dma.vmem_to_hbm [thread:$0]  %s135_s11, 128, %s137_s14, [#allocation3]  }
 0x11d   :  { %v126_v51 = vpop.f32.mrf.mxu1 }
 0x11e   :  { %174 = dma.done.wait [#allocation3], 128  }
 0x11f   :  { %175 = vsyncadd [#allocation3], 4294967168 }
 0x120   :  { %144 = vsyncpa [#allocation3], 1 }

</bundles_post_ra>
